<compile_context>
chip_gen: v7x
topology: tpu7x:2x2x1
jax: 0.10.0
libtpu: 0.0.40
codegen_flags: <defaults>
</compile_context>

<pallas_src>
import jax
import jax.numpy as jnp
from jax.experimental import pallas as pl
from jax.experimental.pallas import tpu as pltpu

LANE = 128          # vreg lane width (last dim must be a multiple of 128)
SUBLANE = 8         # f32 sublane count (second-to-last dim multiple of 8)
MAX_TILE_ROWS = 2048  # (2048, 128) f32 tile = 1 MiB per buffer


def _round_up(x: int, m: int) -> int:
    return ((x + m - 1) // m) * m


def linear_kernel(x_ref, w_ref, b_ref, o_ref):
    # x_ref: (TILE_ROWS, 128) in VMEM; w_ref, b_ref: (1, 1) scalars in SMEM.
    w = w_ref[0, 0]
    b = b_ref[0, 0]
    # Single fused read-scale-add-write on the VPU; cast on store so non-f32
    # inputs (e.g. bf16) keep the output dtype.
    o_ref[...] = (x_ref[...].astype(jnp.float32) * w + b).astype(o_ref.dtype)


def linear_regression_forward(x, w, b, *, tile_rows: int = MAX_TILE_ROWS):
    """nn.Linear(1, 1) forward: x (N, 1), w (1, 1), b (1,) -> (N, 1)."""
    n, in_features = x.shape
    assert in_features == 1, "LinearRegressionModel expects in_features == 1"
    out_dtype = x.dtype

    w_s = w.reshape(1, 1).astype(jnp.float32)
    b_s = b.reshape(1, 1).astype(jnp.float32)

    # ---- Lane-dense re-layout: (N, 1) -> (rows_padded, 128) ----
    flat = x.reshape(-1)
    total = flat.shape[0]
    rows = pl.cdiv(total, LANE)

    # Tile rows: multiple of the f32 sublane count, capped at MAX_TILE_ROWS.
    tr = min(tile_rows, _round_up(rows, SUBLANE))
    tr = _round_up(tr, SUBLANE)
    rows_padded = _round_up(rows, tr)

    padded_total = rows_padded * LANE
    flat = jnp.pad(flat, (0, padded_total - total))
    x2d = flat.reshape(rows_padded, LANE)

    grid = (rows_padded // tr,)
    itemsize = jnp.dtype(out_dtype).itemsize

    out2d = pl.pallas_call(
        linear_kernel,
        out_shape=jax.ShapeDtypeStruct((rows_padded, LANE), out_dtype),
        grid=grid,
        in_specs=[
            pl.BlockSpec((tr, LANE), lambda i: (i, 0)),               # x tile (VMEM)
            pl.BlockSpec(memory_space=pltpu.MemorySpace.SMEM),        # weight scalar
            pl.BlockSpec(memory_space=pltpu.MemorySpace.SMEM),        # bias scalar
        ],
        out_specs=pl.BlockSpec((tr, LANE), lambda i: (i, 0)),
        compiler_params=pltpu.CompilerParams(
            dimension_semantics=("parallel",),  # shard rows across TCs on v7x
        ),
        cost_estimate=pl.CostEstimate(
            flops=2 * padded_total,
            transcendentals=0,
            bytes_accessed=2 * padded_total * itemsize,
        ),
    )(x2d, w_s, b_s)

    # ---- Undo the lane-dense re-layout: drop padding, restore (N, 1) ----
    return out2d.reshape(-1)[:total].reshape(n, 1)


if __name__ == "__main__":
    key = jax.random.PRNGKey(0)
    k_x, k_x2, k_w, k_b = jax.random.split(key, 4)

    # Deterministic parameter init mirroring nn.Linear(1, 1)'s U(-1, 1) bound.
    weight = jax.random.uniform(k_w, (1, 1), jnp.float32, minval=-1.0, maxval=1.0)
    bias = jax.random.uniform(k_b, (1,), jnp.float32, minval=-1.0, maxval=1.0)

    # Case 1: tiny batch matching the original module usage (8 samples, 1 feature).
    x_small = jax.random.normal(k_x, (8, 1), jnp.float32)
    y_small = linear_regression_forward(x_small, weight, bias)
    jax.block_until_ready(y_small)
    ref_small = x_small @ weight.T + bias
    assert y_small.shape == (8, 1)
    assert jnp.allclose(y_small, ref_small, atol=1e-6, rtol=1e-6)

    # Case 2: non-multiple-of-128 batch with a small tile to exercise the
    # multi-step grid, lane-dense padding, and tail slicing.
    x_med = jax.random.normal(k_x2, (3000, 1), jnp.float32)
    y_med = linear_regression_forward(x_med, weight, bias, tile_rows=8)
    jax.block_until_ready(y_med)
    ref_med = x_med @ weight.T + bias
    assert y_med.shape == (3000, 1)
    assert jnp.allclose(y_med, ref_med, atol=1e-6, rtol=1e-6)

    print("KERNEL_OK")
</pallas_src>

<mosaic_0001>
module attributes {stable_mosaic.version = 11 : i64} {
  func.func @linear_kernel(%arg0: i32, %arg1: memref<8x128xf32, #tpu.memory_space<vmem>>, %arg2: memref<1x1xf32, #tpu.memory_space<smem>>, %arg3: memref<1x1xf32, #tpu.memory_space<smem>>, %arg4: memref<8x128xf32, #tpu.memory_space<vmem>>) attributes {dimension_semantics = [#tpu.dimension_semantics<parallel>], iteration_bounds = array<i64: 1>, scalar_prefetch = 0 : i64, scratch_operands = 0 : i64, tpu.core_type = #tpu.core_type<tc>, window_params = [{transform_indices = @transform_0, window_bounds = array<i64: 8, 128>}, {transform_indices = @transform_1, window_bounds = array<i64: 1, 1>}, {transform_indices = @transform_2, window_bounds = array<i64: 1, 1>}, {transform_indices = @transform_3, window_bounds = array<i64: 8, 128>}]} {
    %c0 = arith.constant 0 : index
    %c0_0 = arith.constant 0 : index
    %0 = memref.load %arg2[%c0, %c0_0] : memref<1x1xf32, #tpu.memory_space<smem>>
    %c0_1 = arith.constant 0 : index
    %c0_2 = arith.constant 0 : index
    %1 = memref.load %arg3[%c0_1, %c0_2] : memref<1x1xf32, #tpu.memory_space<smem>>
    %c0_3 = arith.constant 0 : index
    %c0_4 = arith.constant 0 : index
    %2 = vector.load %arg1[%c0_3, %c0_4] : memref<8x128xf32, #tpu.memory_space<vmem>>, vector<8x128xf32>
    %3 = vector.broadcast %0 : f32 to vector<8x128xf32>
    %4 = arith.mulf %2, %3 : vector<8x128xf32>
    %5 = vector.broadcast %1 : f32 to vector<8x128xf32>
    %6 = arith.addf %4, %5 : vector<8x128xf32>
    %c0_5 = arith.constant 0 : index
    %c0_6 = arith.constant 0 : index
    %7 = vector.load %arg4[%c0_5, %c0_6] : memref<8x128xf32, #tpu.memory_space<vmem>>, vector<8x128xf32>
    tpu.vector_store %arg4[%c0_5, %c0_6], %6 {strides = array<i32>} : memref<8x128xf32, #tpu.memory_space<vmem>>, vector<8x128xf32>,
    return
  }
  func.func @transform_0(%arg0: i32) -> (i32, i32) {
    %c0_i32 = arith.constant 0 : i32
    %c0_i32_0 = arith.constant 0 : i32
    return %arg0, %c0_i32 : i32, i32
  }
  func.func @transform_1(%arg0: i32) -> (i32, i32) {
    %c0_i32 = arith.constant 0 : i32
    %c0_i32_0 = arith.constant 0 : i32
    %c0_i32_1 = arith.constant 0 : i32
    return %c0_i32, %c0_i32_0 : i32, i32
  }
  func.func @transform_2(%arg0: i32) -> (i32, i32) {
    %c0_i32 = arith.constant 0 : i32
    %c0_i32_0 = arith.constant 0 : i32
    %c0_i32_1 = arith.constant 0 : i32
    return %c0_i32, %c0_i32_0 : i32, i32
  }
  func.func @transform_3(%arg0: i32) -> (i32, i32) {
    %c0_i32 = arith.constant 0 : i32
    %c0_i32_0 = arith.constant 0 : i32
    return %arg0, %c0_i32 : i32, i32
  }
}

</mosaic_0001>

<bundles_post_ra>
// kernel: tpu_custom_call.1
= control target key start
LH: loop header
LB: loop body
LE: loop exit
PB: predicated region body
PF: predicated region fallthrough
CT: control target
= control target key end

     0   :  { %10 = vsyncpa [#allocation5], 0  ;;  %s154_s0 = inlined_call_operand.hbm [shape: f32[8,128], index: 0, kind: input, shape index: {}]   ;;  %s155_s1 = inlined_call_operand.<no memory space> [shape: f32[1,1], index: 1, kind: input, shape index: {}]   ;;  %s156_s2 = inlined_call_operand.<no memory space> [shape: f32[1,1], index: 2, kind: input, shape index: {}]   ;;  %s157_s3 = inlined_call_operand.hbm [shape: f32[8,128], index: 3, kind: output, shape index: {}]  }
   0x1   :  { %11 = vsyncpa [#allocation6], 0  ;;  %s102_s12 = smov [#allocation4]   ;;  %s54_s16 = scalar_lea.hbm %s154_s0, 128 }
   0x2   :  { %s18_s13 = sshll.u32 %s102_s12, 4  ;;  %p55_p0 = scmp.ne.s32.totalorder %s154_s0, %s54_s16  ;;  %s19_s13 = int_to_ptr.vmem [resolvable:$true] %s18_s13 }
   0x3   :  { %p58_p1 = scmp.lt.u32.totalorder %s54_s16, %s154_s0 }
   0x5   :  { %p60_p2 = pnand %p58_p1, %p55_p0 }
   0x7   :  { %63 = shalt.err (!%p60_p2)
}
   0x8   :  { %s64_s21 = scalar_lea.vmem %s19_s13, 128  ;;  %p69_p4 = scmp.lt.s32.totalorder %s19_s13, %s19_s13 }
   0x9   :  { %p65_p3 = scmp.ne.s32.totalorder %s19_s13, %s64_s21  ;;  %p70_p5 = scmp.lt.s32.totalorder %s64_s21, %s64_s21 }
   0xb   :  { %p71_p6 = por %p70_p5, %p69_p4 }
   0xd   :  { %p72_p7 = pnand %p71_p6, %p65_p3 }
   0xf   :  { %75 = shalt.err (!%p72_p7)
}
  0x10   :  { %21 = dma.hbm_to_vmem [thread:$0]  %s154_s0, 128, %s19_s13, [#allocation5]  }
  0x11   :  { %98 = dma.done.wait [#allocation5], 128  }
  0x12   :  { %99 = vsyncadd [#allocation5], 4294967168  ;;  %v32_v0 = vstv %s155_s1  ;;  %v31_v1 = vld [vmem:[#allocation4] sm:$0xff]  ;;  %v34_v2 = vstv %s156_s2  ;;  %s103_s28 = smov [#allocation7]  }
  0x13   :  { %s43_s29 = sshll.u32 %s103_s28, 4  ;;  %v33_v3 = vmul.f32 %v32_v0, %v31_v1  ;;  %s44_s29 = int_to_ptr.vmem [resolvable:$true] %s43_s29 }
  0x14   :  { %s76_s30 = scalar_lea.vmem %s44_s29, 128  ;;  %p81_p9 = scmp.lt.s32.totalorder %s44_s29, %s44_s29 }
  0x15   :  { %v35_v4 = vadd.f32 %v34_v2, %v33_v3  ;;  %p77_p8 = scmp.ne.s32.totalorder %s44_s29, %s76_s30  ;;  %p82_p10 = scmp.lt.s32.totalorder %s76_s30, %s76_s30 }
  0x17   :  { %36 = vst [vmem:[#allocation7] sm:$0xff] %v35_v4  ;;  %p83_p11 = por %p82_p10, %p81_p9 }
  0x19   :  { %p84_p12 = pnand %p83_p11, %p77_p8 }
  0x1b   :  { %87 = shalt.err (!%p84_p12)
}
  0x1c   :  { %s88_s4 = scalar_lea.hbm %s157_s3, 128 }
  0x1d   :  { %p89_p13 = scmp.ne.s32.totalorder %s157_s3, %s88_s4  ;;  %p92_p0 = scmp.lt.u32.totalorder %s88_s4, %s157_s3 }
  0x1f   :  { %p94_p1 = pnand %p92_p0, %p89_p13 }
  0x21   :  { %97 = shalt.err (!%p94_p1)
}
  0x22   :  { %46 = dma.vmem_to_hbm [thread:$0]  %s44_s29, 128, %s157_s3, [#allocation6]  }
  0x23   :  { %100 = dma.done.wait [#allocation6], 128  }
  0x24   :  { %101 = vsyncadd [#allocation6], 4294967168 }
  0x25   :  { %50 = vsyncpa [#allocation5], 1 }
  0x26   :  { %51 = vsyncpa [#allocation6], 1 }

</bundles_post_ra>
